<compile_context>
chip_gen: v7x
topology: tpu7x:2x2x1
jax: 0.10.0
libtpu: 0.0.40
codegen_flags: <defaults>
</compile_context>

<pallas_src>
import math

import jax
import jax.numpy as jnp
from jax.experimental import pallas as pl
from jax.experimental.pallas import tpu as pltpu


# ------------------------------------------------------------------------------ kernel

def _se_bottleneck_kernel(x_ref, w1_ref, s1_ref, w2_ref, s2_ref, w3_ref, s3_ref,
                          wse1_ref, wse2_ref, o_ref):
    TB, L, Cin = x_ref.shape
    M = TB * L

    xb = x_ref[...]                                   # [TB, L, Cin] bf16
    x2d = xb.reshape(M, Cin)                          # collapse (TB, L) -> matmul rows

    # ---- conv1 (1x1) + bn1 + relu  (bf16 MXU, f32 accumulate) ---------------------
    a1 = jnp.dot(x2d, w1_ref[...], preferred_element_type=jnp.float32) + s1_ref[...]
    a1 = jnp.maximum(a1, 0.0)                         # [M, P] f32

    # ---- conv2 (k=3, stride=1, pad=1) + bn2 + relu --------------------------------
    # Shifted taps via XLU sublane rolls + per-example boundary mask (the mod-L mask
    # also zeroes the rows that would otherwise leak across batch elements in the
    # flattened [TB*L] view).  Taps are stacked along the contraction axis so the
    # whole conv is one K=3P matmul against the host-side K-stacked weight.
    pos = jax.lax.broadcasted_iota(jnp.int32, (M, 1), 0) % L
    t_prev = jnp.where(pos == 0, 0.0, pltpu.roll(a1, shift=1, axis=0))      # a1[l-1]
    t_next = jnp.where(pos == L - 1, 0.0, pltpu.roll(a1, shift=M - 1, axis=0))  # a1[l+1]
    taps = jnp.concatenate([t_prev, a1, t_next], axis=-1).astype(jnp.bfloat16)  # [M,3P]
    a2 = jnp.dot(taps, w2_ref[...], preferred_element_type=jnp.float32) + s2_ref[...]
    a2 = jnp.maximum(a2, 0.0)                         # [M, P]

    # ---- conv3 (1x1) + bn3 (no relu before SE) ------------------------------------
    a3 = jnp.dot(a2.astype(jnp.bfloat16), w3_ref[...],
                 preferred_element_type=jnp.float32) + s3_ref[...]          # [M, C4]
    C4 = a3.shape[-1]
    a3r = a3.reshape(TB, L, C4)

    # ---- SE: per-example global average pool + 2 tiny FCs + sigmoid gate ----------
    pooled = jnp.mean(a3r, axis=1).astype(jnp.bfloat16)                     # [TB, C4]
    h = jnp.maximum(jnp.dot(pooled, wse1_ref[...],
                            preferred_element_type=jnp.float32), 0.0)       # [TB, Ch]
    z = jnp.dot(h.astype(jnp.bfloat16), wse2_ref[...],
                preferred_element_type=jnp.float32)                         # [TB, C4]
    gate = pl.reciprocal(1.0 + jnp.exp(-z), approx=True)                    # sigmoid (EUP)

    # ---- channel gate + residual add + relu; lane-dense bf16 store ----------------
    out = jnp.maximum(a3r * gate[:, None, :] + xb.astype(jnp.float32), 0.0)
    o_ref[...] = out.astype(o_ref.dtype)


# --------------------------------------------------------------------------- host glue

def _fold_bn(w, bn, eps=1e-5):
    """Fold inference-mode BN into the conv weight.

    w: PyTorch layout [C_out, C_in, K].
    Returns (w_folded [K, C_in, C_out] bf16, shift [1, C_out] f32)."""
    scale = bn["gamma"] / jnp.sqrt(bn["var"] + eps)                 # [C_out]
    shift = bn["beta"] - bn["mean"] * scale                         # [C_out]
    w_f = jnp.transpose(w, (2, 1, 0)) * scale[None, None, :]        # [K, C_in, C_out]
    return w_f.astype(jnp.bfloat16), shift.reshape(1, -1).astype(jnp.float32)


def _pick_tb(B, L, target_rows=512):
    """Batch TB examples per grid step so matmuls have M = TB*L >= ~target_rows,
    but keep >= 2 parallel grid steps when B >= 2 (v7x has 2 TensorCores)."""
    tb = max(1, min(B, max(1, target_rows // max(L, 1))))
    while tb > 1 and (B // tb) < 2:
        tb -= 1
    while B % tb != 0:
        tb -= 1
    return max(tb, 1)


def se_bottleneck_forward_nlc(params, x_nlc):
    """SEBottleneck forward (stride=1, downsample=None).

    x_nlc: [B, L, C] channels-last (any float dtype; cast to bf16 for the kernel).
    Returns [B, L, C4] bf16.  Prefer this entry point in a full NLC model — it adds
    zero HBM traffic around the fused kernel."""
    B, L, Cin = x_nlc.shape

    w1, s1 = _fold_bn(params["conv1_w"], params["bn1"]); w1 = w1[0]     # [Cin, P]
    w2, s2 = _fold_bn(params["conv2_w"], params["bn2"])                 # [3, P, P]
    P = w2.shape[1]
    w2 = w2.reshape(3 * P, P)                                           # K-stacked taps
    w3, s3 = _fold_bn(params["conv3_w"], params["bn3"]); w3 = w3[0]     # [P, C4]
    wse1 = jnp.transpose(params["se_fc1_w"]).astype(jnp.bfloat16)       # [C4, Ch]
    wse2 = jnp.transpose(params["se_fc2_w"]).astype(jnp.bfloat16)       # [Ch, C4]

    C4 = w3.shape[1]
    Ch = wse1.shape[1]
    assert Cin == C4, "residual add requires inplanes == planes*4 when downsample=None"

    TB = _pick_tb(B, L)
    x_bf = x_nlc.astype(jnp.bfloat16)

    # Rough per-step VMEM budget: bf16 activations in/out are double-buffered by the
    # pipeline; f32 intermediates + stacked conv2 taps; weights resident (constant
    # index_map => DMA'd once).  Only raise the scoped limit when actually needed,
    # keeping headroom under v7x's 64 MiB physical VMEM.
    rows = TB * L
    vmem_est = (2 * 2 * rows * (Cin + C4) * 2
                + rows * (P + 3 * P + 2 * C4) * 4
                + (Cin * P + 3 * P * P + P * C4 + 2 * C4 * Ch) * 2)
    vmem_limit = None
    if vmem_est > 24 * 1024 * 1024:
        vmem_limit = min(int(1.5 * vmem_est), 56 * 1024 * 1024)

    const2 = lambda b: (0, 0)

    out = pl.pallas_call(
        _se_bottleneck_kernel,
        out_shape=jax.ShapeDtypeStruct((B, L, C4), jnp.bfloat16),
        grid=(B // TB,),
        in_specs=[
            pl.BlockSpec((TB, L, Cin), lambda b: (b, 0, 0)),   # activations (bf16)
            pl.BlockSpec((Cin, P), const2),                    # conv1 weight (bf16)
            pl.BlockSpec((1, P), const2),                      # bn1 shift
            pl.BlockSpec((3 * P, P), const2),                  # conv2 K-stacked taps
            pl.BlockSpec((1, P), const2),                      # bn2 shift
            pl.BlockSpec((P, C4), const2),                     # conv3 weight (bf16)
            pl.BlockSpec((1, C4), const2),                     # bn3 shift
            pl.BlockSpec((C4, Ch), const2),                    # SE fc1 weight (bf16)
            pl.BlockSpec((Ch, C4), const2),                    # SE fc2 weight (bf16)
        ],
        out_specs=pl.BlockSpec((TB, L, C4), lambda b: (b, 0, 0)),
        compiler_params=pltpu.CompilerParams(
            dimension_semantics=("parallel",),
            vmem_limit_bytes=vmem_limit),
    )(x_bf, w1, s1, w2, s2, w3, s3, wse1, wse2)

    return out


def se_bottleneck_forward(params, x_ncl):
    """Compatibility adapter for the PyTorch NCL layout: [B, C, L] -> [B, C, L].

    The two transposes below are pure HBM traffic around the fused kernel; in a real
    NLC pipeline call se_bottleneck_forward_nlc directly and skip them."""
    x_nlc = jnp.transpose(x_ncl, (0, 2, 1))
    out_nlc = se_bottleneck_forward_nlc(params, x_nlc)
    return jnp.transpose(out_nlc, (0, 2, 1))


# ----------------------------------------------------------------- pure-JAX reference

def _reference_forward(params, x_ncl, eps=1e-5):
    def bn(y, p):
        scale = p["gamma"] / jnp.sqrt(p["var"] + eps)
        shift = p["beta"] - p["mean"] * scale
        return y * scale[None, :, None] + shift[None, :, None]

    x = x_ncl.astype(jnp.float32)
    out = jnp.einsum("bcl,pc->bpl", x, params["conv1_w"][:, :, 0])
    out = jax.nn.relu(bn(out, params["bn1"]))
    out = jax.lax.conv_general_dilated(
        out, params["conv2_w"], window_strides=(1,), padding=((1, 1),),
        dimension_numbers=("NCH", "OIH", "NCH"))
    out = jax.nn.relu(bn(out, params["bn2"]))
    out = jnp.einsum("bcl,pc->bpl", out, params["conv3_w"][:, :, 0])
    out = bn(out, params["bn3"])
    y = out.mean(axis=2)                                  # AdaptiveAvgPool1d(1)
    y = jax.nn.relu(y @ params["se_fc1_w"].T)
    y = jax.nn.sigmoid(y @ params["se_fc2_w"].T)
    out = out * y[:, :, None]
    return jax.nn.relu(out + x)


# -------------------------------------------------------------------------------- main

if __name__ == "__main__":
    key = jax.random.PRNGKey(0)
    kx, k1, k2, k3, kb1, kb2, kb3, kf1, kf2 = jax.random.split(key, 9)

    B, L = 2, 64
    planes = 32
    inplanes = planes * 4            # downsample=None  =>  inplanes == planes*expansion
    reduction = 16
    C4 = planes * 4                  # 128 -> lane-dense channel axis
    Ch = C4 // reduction             # 8

    def conv_w(k, cout, cin, ksz):
        return jax.random.normal(k, (cout, cin, ksz), jnp.float32) * math.sqrt(
            2.0 / (cin * ksz))

    def bn_p(k, c):
        a, b, c_, d = jax.random.split(k, 4)
        return dict(
            gamma=jax.random.uniform(a, (c,), jnp.float32, 0.8, 1.2),
            beta=0.05 * jax.random.normal(b, (c,), jnp.float32),
            mean=0.05 * jax.random.normal(c_, (c,), jnp.float32),
            var=jax.random.uniform(d, (c,), jnp.float32, 0.8, 1.2),
        )

    bound1 = 1.0 / math.sqrt(C4)
    bound2 = 1.0 / math.sqrt(Ch)
    params = dict(
        conv1_w=conv_w(k1, planes, inplanes, 1),
        bn1=bn_p(kb1, planes),
        conv2_w=conv_w(k2, planes, planes, 3),
        bn2=bn_p(kb2, planes),
        conv3_w=conv_w(k3, C4, planes, 1),
        bn3=bn_p(kb3, C4),
        se_fc1_w=jax.random.uniform(kf1, (Ch, C4), jnp.float32, -bound1, bound1),
        se_fc2_w=jax.random.uniform(kf2, (C4, Ch), jnp.float32, -bound2, bound2),
    )

    # input: [batch=2, channels=128, length=64]  (PyTorch NCL)
    x = jax.random.normal(kx, (B, inplanes, L), jnp.float32)

    out = se_bottleneck_forward(params, x)
    out = jax.block_until_ready(out)
    assert out.shape == (B, C4, L), out.shape
    out = out.astype(jnp.float32)
    assert bool(jnp.all(jnp.isfinite(out)))

    # correctness vs f32 reference: mixed abs/rel tolerance (bf16 MXU operands and
    # bf16 activation I/O -> small, magnitude-proportional deviation expected)
    ref = _reference_forward(params, x)
    abs_err = jnp.abs(out - ref)
    tol = 0.1 + 0.05 * jnp.abs(ref)
    ok = bool(jnp.all(abs_err <= tol))
    assert ok, ("max_abs_err=%g max_scaled_err=%g"
                % (float(jnp.max(abs_err)), float(jnp.max(abs_err / tol))))

    print("KERNEL_OK")
</pallas_src>

<mosaic_0001>
module attributes {stable_mosaic.version = 11 : i64} {
  func.func @_se_bottleneck_kernel(%arg0: i32, %arg1: memref<1x64x128xbf16, #tpu.memory_space<vmem>>, %arg2: memref<128x32xbf16, #tpu.memory_space<vmem>>, %arg3: memref<1x32xf32, #tpu.memory_space<vmem>>, %arg4: memref<96x32xbf16, #tpu.memory_space<vmem>>, %arg5: memref<1x32xf32, #tpu.memory_space<vmem>>, %arg6: memref<32x128xbf16, #tpu.memory_space<vmem>>, %arg7: memref<1x128xf32, #tpu.memory_space<vmem>>, %arg8: memref<128x8xbf16, #tpu.memory_space<vmem>>, %arg9: memref<8x128xbf16, #tpu.memory_space<vmem>>, %arg10: memref<1x64x128xbf16, #tpu.memory_space<vmem>>) attributes {dimension_semantics = [#tpu.dimension_semantics<parallel>], iteration_bounds = array<i64: 2>, scalar_prefetch = 0 : i64, scratch_operands = 0 : i64, tpu.core_type = #tpu.core_type<tc>, window_params = [{transform_indices = @transform_0, window_bounds = array<i64: 1, 64, 128>}, {pipeline_mode = #tpu.pipeline_mode<synchronous>, transform_indices = @transform_1, window_bounds = array<i64: 128, 32>}, {pipeline_mode = #tpu.pipeline_mode<synchronous>, transform_indices = @transform_2, window_bounds = array<i64: 1, 32>}, {pipeline_mode = #tpu.pipeline_mode<synchronous>, transform_indices = @transform_3, window_bounds = array<i64: 96, 32>}, {pipeline_mode = #tpu.pipeline_mode<synchronous>, transform_indices = @transform_4, window_bounds = array<i64: 1, 32>}, {pipeline_mode = #tpu.pipeline_mode<synchronous>, transform_indices = @transform_5, window_bounds = array<i64: 32, 128>}, {pipeline_mode = #tpu.pipeline_mode<synchronous>, transform_indices = @transform_6, window_bounds = array<i64: 1, 128>}, {pipeline_mode = #tpu.pipeline_mode<synchronous>, transform_indices = @transform_7, window_bounds = array<i64: 128, 8>}, {pipeline_mode = #tpu.pipeline_mode<synchronous>, transform_indices = @transform_8, window_bounds = array<i64: 8, 128>}, {transform_indices = @transform_9, window_bounds = array<i64: 1, 64, 128>}]} {
    %c0 = arith.constant 0 : index
    %c0_0 = arith.constant 0 : index
    %c0_1 = arith.constant 0 : index
    %0 = vector.load %arg1[%c0, %c0_0, %c0_1] : memref<1x64x128xbf16, #tpu.memory_space<vmem>>, vector<1x64x128xbf16>
    %1 = vector.shape_cast %0 : vector<1x64x128xbf16> to vector<64x128xbf16>
    %c0_2 = arith.constant 0 : index
    %c0_3 = arith.constant 0 : index
    %2 = vector.load %arg2[%c0_2, %c0_3] : memref<128x32xbf16, #tpu.memory_space<vmem>>, vector<128x32xbf16>
    %cst = arith.constant dense<0.000000e+00> : vector<64x32xf32>
    %3 = tpu.matmul %1, %2, %cst {dimension_numbers = #tpu.dot_dimension_numbers<[1], [0], [0], [1], [0, 0, 1, 1], [], []>} : vector<64x128xbf16>, vector<128x32xbf16>, vector<64x32xf32> -> vector<64x32xf32>
    %c0_4 = arith.constant 0 : index
    %c0_5 = arith.constant 0 : index
    %4 = vector.load %arg3[%c0_4, %c0_5] : memref<1x32xf32, #tpu.memory_space<vmem>>, vector<1x32xf32>
    %5 = vector.broadcast %4 : vector<1x32xf32> to vector<64x32xf32>
    %6 = arith.addf %3, %5 : vector<64x32xf32>
    %cst_6 = arith.constant 0.000000e+00 : f32
    %7 = vector.broadcast %cst_6 : f32 to vector<64x32xf32>
    %8 = arith.maximumf %6, %7 : vector<64x32xf32>
    %9 = tpu.iota {dimensions = array<i32: 0>} : vector<64x1xi32>
    %c64_i32 = arith.constant 64 : i32
    %c0_i32 = arith.constant 0 : i32
    %10 = arith.cmpi eq, %c64_i32, %c0_i32 : i32
    %c1_i32 = arith.constant 1 : i32
    %11 = arith.select %10, %c1_i32, %c64_i32 : i32
    %12 = vector.broadcast %11 : i32 to vector<64x1xi32>
    %13 = arith.remsi %9, %12 : vector<64x1xi32>
    %c0_i32_7 = arith.constant 0 : i32
    %14 = vector.broadcast %c0_i32_7 : i32 to vector<64x1xi32>
    %15 = arith.cmpi ne, %13, %14 : vector<64x1xi32>
    %c0_i32_8 = arith.constant 0 : i32
    %16 = vector.broadcast %c0_i32_8 : i32 to vector<64x1xi32>
    %17 = arith.cmpi slt, %13, %16 : vector<64x1xi32>
    %c0_i32_9 = arith.constant 0 : i32
    %18 = arith.cmpi slt, %11, %c0_i32_9 : i32
    %19 = vector.broadcast %18 : i1 to vector<64x1xi1>
    %20 = vector.broadcast %19 : vector<64x1xi1> to vector<64x1xi1>
    %21 = arith.xori %17, %20 : vector<64x1xi1>
    %22 = arith.andi %21, %15 : vector<64x1xi1>
    %23 = vector.broadcast %11 : i32 to vector<64x1xi32>
    %24 = arith.addi %13, %23 : vector<64x1xi32>
    %25 = arith.select %22, %24, %13 : vector<64x1xi1>, vector<64x1xi32>
    %c0_i32_10 = arith.constant 0 : i32
    %26 = vector.broadcast %c0_i32_10 : i32 to vector<64x1xi32>
    %27 = arith.cmpi eq, %25, %26 : vector<64x1xi32>
    %c1_i32_11 = arith.constant 1 : i32
    %28 = tpu.dynamic_rotate %8 by %c1_i32_11 dim 0 : vector<64x32xf32>, i32 -> vector<64x32xf32>
    %cst_12 = arith.constant 0.000000e+00 : f32
    %29 = vector.shape_cast %27 : vector<64x1xi1> to vector<64x1xi1>
    %30 = vector.broadcast %29 : vector<64x1xi1> to vector<64x32xi1>
    %31 = vector.broadcast %cst_12 : f32 to vector<64x32xf32>
    %32 = arith.select %30, %31, %28 : vector<64x32xi1>, vector<64x32xf32>
    %c63_i32 = arith.constant 63 : i32
    %33 = vector.broadcast %c63_i32 : i32 to vector<64x1xi32>
    %34 = arith.cmpi eq, %25, %33 : vector<64x1xi32>
    %c63_i32_13 = arith.constant 63 : i32
    %35 = tpu.dynamic_rotate %8 by %c63_i32_13 dim 0 : vector<64x32xf32>, i32 -> vector<64x32xf32>
    %cst_14 = arith.constant 0.000000e+00 : f32
    %36 = vector.shape_cast %34 : vector<64x1xi1> to vector<64x1xi1>
    %37 = vector.broadcast %36 : vector<64x1xi1> to vector<64x32xi1>
    %38 = vector.broadcast %cst_14 : f32 to vector<64x32xf32>
    %39 = arith.select %37, %38, %35 : vector<64x32xi1>, vector<64x32xf32>
    %40 = tpu.concatenate %32, %8, %39 in 1 : vector<64x32xf32>, vector<64x32xf32>, vector<64x32xf32> -> vector<64x96xf32>
    %41 = arith.truncf %40 : vector<64x96xf32> to vector<64x96xbf16>
    %c0_15 = arith.constant 0 : index
    %c0_16 = arith.constant 0 : index
    %42 = vector.load %arg4[%c0_15, %c0_16] : memref<96x32xbf16, #tpu.memory_space<vmem>>, vector<96x32xbf16>
    %cst_17 = arith.constant dense<0.000000e+00> : vector<64x32xf32>
    %43 = tpu.matmul %41, %42, %cst_17 {dimension_numbers = #tpu.dot_dimension_numbers<[1], [0], [0], [1], [0, 0, 1, 1], [], []>} : vector<64x96xbf16>, vector<96x32xbf16>, vector<64x32xf32> -> vector<64x32xf32>
    %c0_18 = arith.constant 0 : index
    %c0_19 = arith.constant 0 : index
    %44 = vector.load %arg5[%c0_18, %c0_19] : memref<1x32xf32, #tpu.memory_space<vmem>>, vector<1x32xf32>
    %45 = vector.broadcast %44 : vector<1x32xf32> to vector<64x32xf32>
    %46 = arith.addf %43, %45 : vector<64x32xf32>
    %cst_20 = arith.constant 0.000000e+00 : f32
    %47 = vector.broadcast %cst_20 : f32 to vector<64x32xf32>
    %48 = arith.maximumf %46, %47 : vector<64x32xf32>
    %49 = arith.truncf %48 : vector<64x32xf32> to vector<64x32xbf16>
    %c0_21 = arith.constant 0 : index
    %c0_22 = arith.constant 0 : index
    %50 = vector.load %arg6[%c0_21, %c0_22] : memref<32x128xbf16, #tpu.memory_space<vmem>>, vector<32x128xbf16>
    %cst_23 = arith.constant dense<0.000000e+00> : vector<64x128xf32>
    %51 = tpu.matmul %49, %50, %cst_23 {dimension_numbers = #tpu.dot_dimension_numbers<[1], [0], [0], [1], [0, 0, 1, 1], [], []>} : vector<64x32xbf16>, vector<32x128xbf16>, vector<64x128xf32> -> vector<64x128xf32>
    %c0_24 = arith.constant 0 : index
    %c0_25 = arith.constant 0 : index
    %52 = vector.load %arg7[%c0_24, %c0_25] : memref<1x128xf32, #tpu.memory_space<vmem>>, vector<1x128xf32>
    %53 = vector.broadcast %52 : vector<1x128xf32> to vector<64x128xf32>
    %54 = arith.addf %51, %53 : vector<64x128xf32>
    %55 = vector.shape_cast %54 : vector<64x128xf32> to vector<1x64x128xf32>
    %cst_26 = arith.constant dense<0.000000e+00> : vector<1x128xf32>
    %56 = vector.multi_reduction <add>, %55, %cst_26 [1] : vector<1x64x128xf32> to vector<1x128xf32>
    %cst_27 = arith.constant 6.400000e+01 : f32
    %57 = vector.broadcast %cst_27 : f32 to vector<1x128xf32>
    %58 = arith.divf %56, %57 : vector<1x128xf32>
    %59 = arith.truncf %58 : vector<1x128xf32> to vector<1x128xbf16>
    %c0_28 = arith.constant 0 : index
    %c0_29 = arith.constant 0 : index
    %60 = vector.load %arg8[%c0_28, %c0_29] : memref<128x8xbf16, #tpu.memory_space<vmem>>, vector<128x8xbf16>
    %cst_30 = arith.constant dense<0.000000e+00> : vector<1x8xf32>
    %61 = tpu.matmul %59, %60, %cst_30 {dimension_numbers = #tpu.dot_dimension_numbers<[1], [0], [0], [1], [0, 0, 1, 1], [], []>} : vector<1x128xbf16>, vector<128x8xbf16>, vector<1x8xf32> -> vector<1x8xf32>
    %cst_31 = arith.constant 0.000000e+00 : f32
    %62 = vector.broadcast %cst_31 : f32 to vector<1x8xf32>
    %63 = arith.maximumf %61, %62 : vector<1x8xf32>
    %64 = arith.truncf %63 : vector<1x8xf32> to vector<1x8xbf16>
    %c0_32 = arith.constant 0 : index
    %c0_33 = arith.constant 0 : index
    %65 = vector.load %arg9[%c0_32, %c0_33] : memref<8x128xbf16, #tpu.memory_space<vmem>>, vector<8x128xbf16>
    %cst_34 = arith.constant dense<0.000000e+00> : vector<1x128xf32>
    %66 = tpu.matmul %64, %65, %cst_34 {dimension_numbers = #tpu.dot_dimension_numbers<[1], [0], [0], [1], [0, 0, 1, 1], [], []>} : vector<1x8xbf16>, vector<8x128xbf16>, vector<1x128xf32> -> vector<1x128xf32>
    %cst_35 = arith.constant 0.000000e+00 : f32
    %67 = vector.broadcast %cst_35 : f32 to vector<1x128xf32>
    %68 = arith.subf %67, %66 : vector<1x128xf32>
    %69 = math.exp %68 : vector<1x128xf32>
    %cst_36 = arith.constant 1.000000e+00 : f32
    %70 = vector.broadcast %cst_36 : f32 to vector<1x128xf32>
    %71 = arith.addf %70, %69 : vector<1x128xf32>
    %72 = tpu.reciprocal %71 {approx = true} : vector<1x128xf32> -> vector<1x128xf32>
    %73 = vector.shape_cast %72 : vector<1x128xf32> to vector<1x1x128xf32>
    %74 = vector.broadcast %73 : vector<1x1x128xf32> to vector<1x64x128xf32>
    %75 = arith.mulf %55, %74 : vector<1x64x128xf32>
    %76 = arith.extf %0 : vector<1x64x128xbf16> to vector<1x64x128xf32>
    %77 = arith.addf %75, %76 : vector<1x64x128xf32>
    %cst_37 = arith.constant 0.000000e+00 : f32
    %78 = vector.broadcast %cst_37 : f32 to vector<1x64x128xf32>
    %79 = arith.maximumf %77, %78 : vector<1x64x128xf32>
    %80 = arith.truncf %79 : vector<1x64x128xf32> to vector<1x64x128xbf16>
    %c0_38 = arith.constant 0 : index
    %c0_39 = arith.constant 0 : index
    %c0_40 = arith.constant 0 : index
    %81 = vector.load %arg10[%c0_38, %c0_39, %c0_40] : memref<1x64x128xbf16, #tpu.memory_space<vmem>>, vector<1x64x128xbf16>
    tpu.vector_store %arg10[%c0_38, %c0_39, %c0_40], %80 {strides = array<i32>} : memref<1x64x128xbf16, #tpu.memory_space<vmem>>, vector<1x64x128xbf16>,
    return
  }
  func.func @transform_0(%arg0: i32) -> (i32, i32, i32) {
    %c0_i32 = arith.constant 0 : i32
    %c0_i32_0 = arith.constant 0 : i32
    %c0_i32_1 = arith.constant 0 : i32
    return %arg0, %c0_i32, %c0_i32_0 : i32, i32, i32
  }
  func.func @transform_1(%arg0: i32) -> (i32, i32) {
    %c0_i32 = arith.constant 0 : i32
    %c0_i32_0 = arith.constant 0 : i32
    %c0_i32_1 = arith.constant 0 : i32
    return %c0_i32, %c0_i32_0 : i32, i32
  }
  func.func @transform_2(%arg0: i32) -> (i32, i32) {
    %c0_i32 = arith.constant 0 : i32
    %c0_i32_0 = arith.constant 0 : i32
    %c0_i32_1 = arith.constant 0 : i32
    return %c0_i32, %c0_i32_0 : i32, i32
  }
  func.func @transform_3(%arg0: i32) -> (i32, i32) {
    %c0_i32 = arith.constant 0 : i32
    %c0_i32_0 = arith.constant 0 : i32
    %c0_i32_1 = arith.constant 0 : i32
    return %c0_i32, %c0_i32_0 : i32, i32
  }
  func.func @transform_4(%arg0: i32) -> (i32, i32) {
    %c0_i32 = arith.constant 0 : i32
    %c0_i32_0 = arith.constant 0 : i32
    %c0_i32_1 = arith.constant 0 : i32
    return %c0_i32, %c0_i32_0 : i32, i32
  }
  func.func @transform_5(%arg0: i32) -> (i32, i32) {
    %c0_i32 = arith.constant 0 : i32
    %c0_i32_0 = arith.constant 0 : i32
    %c0_i32_1 = arith.constant 0 : i32
    return %c0_i32, %c0_i32_0 : i32, i32
  }
  func.func @transform_6(%arg0: i32) -> (i32, i32) {
    %c0_i32 = arith.constant 0 : i32
    %c0_i32_0 = arith.constant 0 : i32
    %c0_i32_1 = arith.constant 0 : i32
    return %c0_i32, %c0_i32_0 : i32, i32
  }
  func.func @transform_7(%arg0: i32) -> (i32, i32) {
    %c0_i32 = arith.constant 0 : i32
    %c0_i32_0 = arith.constant 0 : i32
    %c0_i32_1 = arith.constant 0 : i32
    return %c0_i32, %c0_i32_0 : i32, i32
  }
  func.func @transform_8(%arg0: i32) -> (i32, i32) {
    %c0_i32 = arith.constant 0 : i32
    %c0_i32_0 = arith.constant 0 : i32
    %c0_i32_1 = arith.constant 0 : i32
    return %c0_i32, %c0_i32_0 : i32, i32
  }
  func.func @transform_9(%arg0: i32) -> (i32, i32, i32) {
    %c0_i32 = arith.constant 0 : i32
    %c0_i32_0 = arith.constant 0 : i32
    %c0_i32_1 = arith.constant 0 : i32
    return %arg0, %c0_i32, %c0_i32_0 : i32, i32, i32
  }
}

</mosaic_0001>

<bundles_post_ra>
// kernel: tpu_custom_call.1
= control target key start
LH: loop header
LB: loop body
LE: loop exit
PB: predicated region body
PF: predicated region fallthrough
CT: control target
= control target key end

     0   :  { %14 = vsyncpa [#allocation3], 0  ;;  %s2125_s0 = inlined_call_operand.vmem [shape: bf16[2,64,128], index: 0, kind: input, shape index: {}]   ;;  %s2126_s1 = inlined_call_operand.vmem [shape: bf16[128,32], index: 1, kind: input, shape index: {}]   ;;  %s2127_s2 = inlined_call_operand.vmem [shape: f32[1,32], index: 2, kind: input, shape index: {}]   ;;  %s2128_s3 = inlined_call_operand.vmem [shape: bf16[96,32], index: 3, kind: input, shape index: {}]   ;;  %s2129_s4 = inlined_call_operand.vmem [shape: f32[1,32], index: 4, kind: input, shape index: {}]   ;;  %s2130_s5 = inlined_call_operand.vmem [shape: bf16[32,128], index: 5, kind: input, shape index: {}]   ;;  %s2131_s6 = inlined_call_operand.vmem [shape: f32[1,128], index: 6, kind: input, shape index: {}]   ;;  %s2132_s7 = inlined_call_operand.vmem [shape: bf16[128,8], index: 7, kind: input, shape index: {}]   ;;  %s2133_s8 = inlined_call_operand.vmem [shape: bf16[8,128], index: 8, kind: input, shape index: {}]   ;;  %s2134_s9 = inlined_call_operand.hbm [shape: bf16[2,64,128], index: 9, kind: output, shape index: {}]  }
   0x1   :  { %16 = vsyncpa [#allocation3 + $0x1], 0  ;;  %s1824_s30 = smov 0   ;;  %s1826_s10 = smov 0  }
   0x2   :  { %s1828_s11 = smov 0   ;;  %s1830_s12 = smov 0  }
   0x3 LB: > { %s1845_s13 = sadd.s32 4294967295, %s1766_s12   ;;  %s1370_s14 = sadd.s32 4294967294, %s1766_s12   ;;  %s1766_s12 = sphi %s1830_s12, %s2142_s12   ;;  %s1762_s11 = sphi %s1828_s11, %s2141_s11   ;;  %s1758_s10 = sphi %s1826_s10, %s2140_s10   ;;  %s1754_s30 = sphi %s1824_s30, %s2139_s30  }
   0x4   : > { %s1849_s15 = sadd.s32 1, %s1766_s12   ;;  %s223_s16 = sadd.s32 1, %s1762_s11 }
   0x5   : > { %s220_s17 = ssub.s32 %s1766_s12, %s1849_s15  ;;  %p233_p0 = scmp.ne.s32.totalorder %s1762_s11, %s1758_s10 }
   0x6   : > { %p221_p1 = scmp.eq.s32.totalorder %s220_s17, 0  ;;  %p234_p2 = scmp.eq.s32.totalorder %s1845_s13, 1 }
   0x7   : > { %p239_p3 = scmp.ne.s32.totalorder %s1758_s10, %s1754_s30  ;;  %p240_p4 = scmp.eq.s32.totalorder %s1370_s14, 1 }
   0x8   : > { %s1860_s18 = scalar_select %p221_p1, %s1762_s11, %s223_s16  }
   0x9   : > { %p1862_p5 = por %p234_p2, %p233_p0  ;;  %p1866_p6 = por %p240_p4, %p239_p3 }
   0xa   : > { %p1373_p7 = scmp.ge.s32.totalorder %s1766_s12, 1  ;;  %p290_p8 = scmp.lt.s32.totalorder %s1766_s12, 3 }
   0xc   : > { %p291_p9 = pnand %p1373_p7, %p290_p8 }
   0xd   : > { %v1668_v0 = vld [vmem:[%s2126_s1] sm:$0xff] (!%p291_p9)   ;;  %p326_p10 = scmp.lt.s32.totalorder (!%p291_p9), %s1845_s13, 1  ;;  %v1669_v1 = vld [vmem:[%s2126_s1 + $0x8] sm:$0xff] (!%p291_p9)   ;;  %v1670_v2 = vld [vmem:[%s2126_s1 + $0x10] sm:$0xff] (!%p291_p9)   ;;  %v508_v15 = vlaneseq (!%p291_p9)  ;;  %s1768_s21 = smov (!%p291_p9), 32   ;;  %vm775_vm4 = vcmask (!%p291_p9), 261120  }
   0xe   : > { %294 = sbr.rel (%p291_p9) target bundleno = 1347 (0x543), region = 56  ;;  %1502 = vmatprep.subr.bf16.mxu0 (!%p291_p9), %v1668_v0  ;;  %v1671_v3 = vld [vmem:[%s2126_s1 + $0x18] sm:$0xff] (!%p291_p9)   ;;  %v1672_v5 = vld [vmem:[%s2126_s1 + $0x20] sm:$0xff] (!%p291_p9)   ;;  %v1673_v6 = vld [vmem:[%s2126_s1 + $0x28] sm:$0xff] (!%p291_p9)   ;;  %s1769_s22 = smov (!%p291_p9), 64   ;;  %vm784_vm5 = vcmask (!%p291_p9), 523264  }
   0xf   : > { %1503 = vmatpush3.bf16.msra.mxu0 (!%p291_p9), %v1668_v0  ;;  %v1674_v7 = vld [vmem:[%s2126_s1 + $0x30] sm:$0xff] (!%p291_p9)   ;;  %v1675_v8 = vld [vmem:[%s2126_s1 + $0x38] sm:$0xff] (!%p291_p9)   ;;  %v1680_v12 = vld [vmem:[%s2128_s3] sm:$0xff] (!%p291_p9)   ;;  %v1928_v19 = vshrl.u32 (!%p291_p9), %v508_v15, 7  ;;  %vm852_vm6 = vcmask (!%p291_p9), 785408   ;;  %vm1771_vm7 = vmmov (!%p291_p9), 0  }
  0x10   : > { %1504 = vmatprep.subr.bf16.mxu0 (!%p291_p9), %v1669_v1  ;;  %v1681_v13 = vld [vmem:[%s2128_s3 + $0x8] sm:$0xff] (!%p291_p9)   ;;  %1526 = vmatprep.subr.bf16.mxu1 (!%p291_p9), %v1680_v12  ;;  %v1682_v14 = vld [vmem:[%s2128_s3 + $0x10] sm:$0xff] (!%p291_p9)   ;;  %v1683_v16 = vld [vmem:[%s2128_s3 + $0x18] sm:$0xff] (!%p291_p9)   ;;  %vm1169_vm8 = vcmask (!%p291_p9), 1043456   ;;  %vm1165_vm9 = vcmask (!%p291_p9), 64512   ;;  %s323_s26 = sand.u32 (!%p291_p9), 1, %s1758_s10  }
  0x11   : > { %1527 = vmatpush3.bf16.msra.mxu1 (!%p291_p9), %v1680_v12  ;;  %v1377_v17 = vld [vmem:[%s2127_s2] ss:$0 sm:$0xff] (!%p291_p9)  ;;  %v516_v25 = vadd.s32 (!%p291_p9), 56, %v1928_v19  ;;  %vm678_vm0 = vcmp.lt.s32.totalorder (!%p291_p9), %v1928_v19, 7  ;;  %vm629_vm1 = vcmp.lt.s32.totalorder (!%p291_p9), %v1928_v19, 1  ;;  %v1685_v39 = vld [vmem:[%s2128_s3 + $0x28] sm:$0xff] (!%p291_p9)  }
  0x12   : > { %1528 = vmatprep.subr.bf16.mxu1 (!%p291_p9), %v1681_v13  ;;  %v1684_v22 = vld [vmem:[%s2128_s3 + $0x20] sm:$0xff] (!%p291_p9)   ;;  %s1374_s27 = sshll.u32 (!%p291_p9), %s323_s26, 5 }
  0x13   : > { %1505 = vmatpush3.bf16.msra.mxu0 (!%p291_p9), %v1669_v1  ;;  %v570_v34 = vand.u32 (!%p291_p9), 63, %v516_v25  ;;  %s325_s29 = scalar_lea.vmem (!%p291_p9), [#allocation2], %s1374_s27 }
  0x14   : > { %1506 = vmatprep.subr.bf16.mxu0 (!%p291_p9), %v1670_v2  ;;  %s1308_s14 = sshll.u32 (!%p291_p9), %s325_s29, 4  ;;  %s2078_s14 = int_to_ptr.vmem [resolvable:$true] %s1308_s14 }
  0x15   : > { %s327_s25 = scalar_select %p326_p10, %s1845_s13, 1  ;;  %1529 = vmatpush3.bf16.msra.mxu1 %v1681_v13  ;;  %vm1962_vm2 = vcmp.eq.s32.totalorder %v570_v34, 63 }
  0x16   : > { %1530 = vmatprep.subr.bf16.mxu1 %v1682_v14  ;;  %s1704_s24 = scalar_lea.vmem %s2078_s14, 512 }
  0x17   : > { %s1430_s28 = sshll.u32 %s327_s25, 5  ;;  %1507 = vmatpush3.bf16.msra.mxu0 %v1670_v2  ;;  %p1705_p11 = scmp.ne.s32.totalorder %s2078_s14, %s1704_s24 }
  0x18   : > { %s330_s16 = scalar_lea.vmem %s2125_s0, %s1430_s28  ;;  %1508 = vmatprep.subr.bf16.mxu0 %v1671_v3  ;;  %s1439_s28 = sshll.u32 %s1845_s13, 9 }
  0x19   : > { %v1889_v4 = vld [vmem:[%s330_s16] sm:$0xff]   ;;  %v1904_v9 = vld [vmem:[%s330_s16 + $0x8] sm:$0xff]   ;;  %v1906_v10 = vld [vmem:[%s330_s16 + $0x10] sm:$0xff]   ;;  %1531 = vmatpush3.bf16.msra.mxu1 %v1682_v14  ;;  %s2076_s23 = scalar_lea.hbm %s2134_s9, %s1439_s28  ;;  %s2082_s13 = scalar_lea.sflag [#allocation3], %s323_s26 }
  0x1a   : > { %1518 = vmatprep.mubr.bf16.mxu0 %v1889_v4  ;;  %v1910_v11 = vld [vmem:[%s330_s16 + $0x18] sm:$0xff]   ;;  %1532 = vmatprep.subr.bf16.mxu1 %v1683_v16  ;;  %p1706_p12 = pnand %p1705_p11, %p1862_p5  ;;  %s1772_s16 = smov [#allocation2]  }
  0x1b   : > { %1509 = vmatpush3.bf16.msra.mxu0 %v1671_v3  ;;  %s1708_s25 = sshll.u32 %s1772_s16, 4  ;;  %s1709_s25 = int_to_ptr.vmem [resolvable:$false] %s1708_s25 }
  0x1c   : > { %1510 = vmatprep.subr.bf16.mxu0 %v1672_v5  ;;  %p1707_p13 = pneg %p1706_p12  ;;  %s1710_s27 = scalar_lea.vmem %s1709_s25, 1024 }
  0x1d   : > { %1533 = vmatpush3.bf16.msra.mxu1 %v1683_v16  ;;  %p1711_p0 = scmp.lt.s32.totalorder %s2078_s14, %s1709_s25  ;;  %p1712_p1 = scmp.lt.s32.totalorder %s1710_s27, %s1704_s24 }
  0x1e   : > { %1534 = vmatprep.subr.bf16.mxu1 %v1684_v22 }
  0x1f   : > { %1511 = vmatpush3.bf16.msra.mxu0 %v1672_v5  ;;  %p1713_p2 = por %p1712_p1, %p1711_p0 }
  0x20   : > { %1512 = vmatprep.subr.bf16.mxu0 %v1673_v6 }
  0x21   : > { %1535 = vmatpush3.bf16.msra.mxu1 %v1684_v22  ;;  %p1714_p3 = pnand %p1713_p2, %p1707_p13 }
  0x22   : > { %1536 = vmatprep.subr.bf16.mxu1 %v1685_v39 }
  0x23   : > { %1513 = vmatpush3.bf16.msra.mxu0 %v1673_v6 }
  0x24   : > { %1514 = vmatprep.subr.bf16.mxu0 %v1674_v7 }
  0x25   : > { %1537 = vmatpush3.bf16.msra.mxu1 %v1685_v39 }
  0x27   : > { %1515 = vmatpush3.bf16.msra.mxu0 %v1674_v7 }
  0x28   : > { %1516 = vmatprep.subr.bf16.mxu0 %v1675_v8 }
  0x2b   : > { %1517 = vmatpush3.bf16.msra.mxu0 %v1675_v8 }
  0x2e   : > { %1519 = vmatmul.mubr.bf16.vlgmr.msra.gmra.mrb[0].mxu0 %v1904_v9 }
  0x2f   : > { %1522 = vmatprep.mubr.bf16.mxu0 %v1906_v10 }
  0x36   : > { %1523 = vmatmul.mubr.bf16.gmra.mrb[4].mxu0 %v1910_v11 }
 0x101   : > { %v1520_v18 = vpop.f32.mrb[0].mxu0 }
 0x102   : > { %v478_v20 = vadd.f32 %v1520_v18, %v1377_v17  ;;  %v469_v21 = vpop.f32.mrb[1].mxu0 }
 0x103   : > { %v470_v23 = vadd.f32 %v1377_v17, %v469_v21  ;;  %v1521_v24 = vpop.f32.mrb[2].mxu0 }
 0x104   : > { %v502_v26 = vmax.f32 %v478_v20, 0.0  ;;  %v481_v27 = vadd.f32 %v1521_v24, %v1377_v17  ;;  %v472_v28 = vpop.f32.mrb[3].mxu0 }
 0x105   : > { %v1934_v29 = vmax.f32 %v470_v23, 0.0  ;;  %v473_v30 = vadd.f32 %v1377_v17, %v472_v28 }
 0x106   : > { %v503_v31 = vmax.f32 %v481_v27, 0.0  ;;  %v623_v32 = vrot.slane %v502_v26, 7  ;;  %v672_v35 = vrot.slane %v502_v26, 1 }
 0x107   : > { %v501_v33 = vmax.f32 %v473_v30, 0.0  ;;  %v670_v40 = vrot.slane %v1934_v29, 1  ;;  %v621_v45 = vrot.slane %v1934_v29, 7 }
 0x108   : > { %v624_v36 = vrot.slane %v503_v31, 7  ;;  %v673_v37 = vrot.slane %v503_v31, 1  ;;  %v1633_v38 = vpack.i.bf16 %v503_v31, %v502_v26  ;;  %v521_v31 = vand.u32 63, %v1928_v19 }
 0x109   : > { %v622_v41 = vrot.slane %v501_v33, 7  ;;  %v671_v42 = vrot.slane %v501_v33, 1  ;;  %v1524_v43 = vpop.f32.mrb[4].mxu0  ;;  %v1628_v44 = vpack.i.bf16 %v501_v33, %v1934_v29  ;;  %v1686_v29 = vld [vmem:[%s2130_s5] sm:$0xff]  }
 0x10a   : > { %v494_v46 = vadd.f32 %v1524_v43, %v1377_v17  ;;  %v485_v47 = vpop.f32.mrb[5].mxu0  ;;  %v683_v48 = vsel %vm678_vm0, %v672_v35, %v673_v37  ;;  %v1948_v49 = vsel %vm629_vm1, %v623_v32, %v624_v36  ;;  %1546 = vmatprep.subr.bf16.mxu1 %v1686_v29  ;;  %vm613_vm3 = vcmp.eq.s32.totalorder %v521_v31, 0 }
 0x10b   : > { %v486_v50 = vadd.f32 %v1377_v17, %v485_v47  ;;  %v1525_v51 = vpop.f32.mrb[6].mxu0  ;;  %1629 = vrot.lane.b32.xlu0 %v1628_v44, %s1768_s21  ;;  %v684_v52 = vsel %vm678_vm0, %v671_v42, %v672_v35  ;;  %v685_v53 = vsel %vm678_vm0, %v670_v40, %v671_v42  ;;  %v1957_v54 = vsel %vm629_vm1, %v622_v41, %v623_v32 }
 0x10c   : > { %v506_v55 = vmax.f32 %v494_v46, 0.0  ;;  %v497_v56 = vadd.f32 %v1525_v51, %v1377_v17  ;;  %v488_v57 = vpop.f32.mrb[7].mxu0  ;;  %v1638_v58 = vpack.i.bf16 %v684_v52, %v685_v53  ;;  %v636_v59 = vsel %vm629_vm1, %v621_v45, %v622_v41 }
 0x10d   : > { %v504_v60 = vmax.f32 %v486_v50, 0.0  ;;  %v489_v61 = vadd.f32 %v1377_v17, %v488_v57 }
 0x10e   : > { %v507_v62 = vmax.f32 %v497_v56, 0.0  ;;  %1639 = vrot.lane.b32.xlu1 %v1638_v58, %s1769_s22  ;;  %v627_v0 = vrot.slane %v506_v55, 7  ;;  %v676_v5 = vrot.slane %v506_v55, 1 }
 0x10f   : > { %v625_v1 = vrot.slane %v504_v60, 7  ;;  %v674_v2 = vrot.slane %v504_v60, 1  ;;  %v505_v3 = vmax.f32 %v489_v61, 0.0  ;;  %1634 = vrot.lane.b32.xlu0 %v1633_v38, %s1768_s21 }
 0x110   : > { %v628_v6 = vrot.slane %v507_v62, 7  ;;  %v677_v7 = vrot.slane %v507_v62, 1  ;;  %v1653_v8 = vpack.i.bf16 %v507_v62, %v506_v55 }
 0x111   : > { %v626_v12 = vrot.slane %v505_v3, 7  ;;  %v675_v13 = vrot.slane %v505_v3, 1  ;;  %v1643_v14 = vpack.i.bf16 %v505_v3, %v504_v60  ;;  %v682_v15 = vsel %vm678_vm0, %v673_v37, %v674_v2 }
 0x112   : > { %v1648_v16 = vpack.i.bf16 %v682_v15, %v683_v48  ;;  %v679_v17 = vsel %vm678_vm0, %v676_v5, %v677_v7  ;;  %v686_v18 = vsel %vm678_vm0, %v677_v7, %v670_v40  ;;  %v633_v20 = vsel %vm629_vm1, %v624_v36, %v625_v1 }
 0x113   : > { %1644 = vrot.lane.b32.xlu0 %v1643_v14, %s1768_s21  ;;  %v680_v21 = vsel %vm678_vm0, %v675_v13, %v676_v5  ;;  %v681_v22 = vsel %vm678_vm0, %v674_v2, %v675_v13  ;;  %v710_v23 = vsel %vm1962_vm2, 0.0, %v686_v18  ;;  %v632_v24 = vsel %vm629_vm1, %v625_v1, %v626_v12  ;;  %v1390_v18 = vld [vmem:[%s2129_s4] ss:$0 sm:$0xff] }
 0x114   : > { %1649 = vrot.lane.b32.xlu1 %v1648_v16, %s1769_s22  ;;  %v1658_v25 = vpack.i.bf16 %v680_v21, %v681_v22  ;;  %v1663_v26 = vpack.i.bf16 %v710_v23, %v679_v17  ;;  %v637_v27 = vsel %vm629_vm1, %v628_v6, %v621_v45  ;;  %v630_v28 = vsel %vm629_vm1, %v627_v0, %v628_v6  ;;  %v1687_v17 = vld [vmem:[%s2130_s5 + $0x8] sm:$0xff]  }
 0x115   : > { %v631_v30 = vsel %vm629_vm1, %v626_v12, %v627_v0  ;;  %v654_v39 = vsel %vm613_vm3, 0.0, %v637_v27 }
 0x117   : > { %1659 = vrot.lane.b32.xlu0 %v1658_v25, %s1769_s22 }
 0x118   : > { %1654 = vrot.lane.b32.xlu1 %v1653_v8, %s1768_s21 }
 0x11c   : > { %1664 = vrot.lane.b32.xlu1 %v1663_v26, %s1769_s22 }
 0x17d   : > { %v1630_v32 = vpop.permute.xlu0 %1629 }
 0x17e   : > { %v1632_v33 = vunpack.i.h.bf16 %v1630_v32  ;;  %v1631_v34 = vunpack.i.l.bf16 %v1630_v32 }
 0x180   : > { %v1640_v35 = vpop.permute.xlu1 %1639  ;;  %v776_v40 = vsel %vm775_vm4, %v654_v39, %v1631_v34  ;;  %v777_v41 = vsel %vm775_vm4, %v636_v59, %v1632_v33 }
 0x181   : > { %v1642_v36 = vunpack.i.h.bf16 %v1640_v35  ;;  %v1641_v37 = vunpack.i.l.bf16 %v1640_v35  ;;  %v1635_v38 = vpop.permute.xlu0 %1634 }
 0x182   : > { %v1637_v44 = vunpack.i.h.bf16 %v1635_v38  ;;  %v1636_v45 = vunpack.i.l.bf16 %v1635_v38 }
 0x183   : > { %v785_v42 = vsel %vm784_vm5, %v776_v40, %v1641_v37  ;;  %v786_v43 = vsel %vm784_vm5, %v777_v41, %v1642_v36 }
 0x184   : > { %v793_v46 = vpack.c.bf16 %v786_v43, %v785_v42  ;;  %v779_v55 = vsel %vm775_vm4, %v1948_v49, %v1637_v44  ;;  %v778_v56 = vsel %vm775_vm4, %v1957_v54, %v1636_v45 }
 0x185   : > { %v1645_v47 = vpop.permute.xlu0 %1644 }
 0x186   : > { %v1650_v48 = vpop.permute.xlu1 %1649  ;;  %1538 = vmatprep.mubr.msk.bf16.mxu1 %vm852_vm6, %v793_v46  ;;  %v1647_v50 = vunpack.i.h.bf16 %v1645_v47  ;;  %v1646_v51 = vunpack.i.l.bf16 %v1645_v47 }
 0x187   : > { %v1652_v52 = vunpack.i.h.bf16 %v1650_v48  ;;  %v1651_v53 = vunpack.i.l.bf16 %v1650_v48  ;;  %v1688_v48 = vld [vmem:[%s2132_s7] sm:$0xff]  }
 0x188   : > { %v781_v0 = vsel %vm775_vm4, %v632_v24, %v1647_v50  ;;  %v780_v1 = vsel %vm775_vm4, %v633_v20, %v1646_v51  ;;  %v1770_v50 = vmov 0.0   ;;  %v1689_v51 = vld [vmem:[%s2132_s7 + $0x8] sm:$0xff]  }
 0x189   : > { %v788_v57 = vsel %vm784_vm5, %v779_v55, %v1652_v52  ;;  %v787_v58 = vsel %vm784_vm5, %v778_v56, %v1651_v53  ;;  %v1660_v59 = vpop.permute.xlu0 %1659  ;;  %1558 = vmatprep.subr.bf16.mxu0 %v1770_v50  ;;  %v1690_v52 = vld [vmem:[%s2132_s7 + $0x10] sm:$0xff]   ;;  %v1691_v53 = vld [vmem:[%s2132_s7 + $0x18] sm:$0xff]   ;;  %v1692_v55 = vld [vmem:[%s2132_s7 + $0x20] sm:$0xff]   ;;  %1574 = vmatprep.mubr.msk.bf16.mxu0 %vm1771_vm7, %v1770_v50 }
 0x18a   : > { %v794_v60 = vpack.c.bf16 %v788_v57, %v787_v58  ;;  %v1662_v61 = vunpack.i.h.bf16 %v1660_v59  ;;  %v1661_v62 = vunpack.i.l.bf16 %v1660_v59  ;;  %v1655_v63 = vpop.permute.xlu1 %1654  ;;  %1559 = vmatpush3.bf16.msra.mxu0 %v1688_v48  ;;  %v1693_v56 = vld [vmem:[%s2132_s7 + $0x28] sm:$0xff]   ;;  %v1694_v57 = vld [vmem:[%s2132_s7 + $0x30] sm:$0xff]   ;;  %v1695_v58 = vld [vmem:[%s2132_s7 + $0x38] sm:$0xff]   ;;  %v1230_v48 = vunpack.c.l.bf16 %v1889_v4 }
 0x18b   : > { %v1657_v3 = vunpack.i.h.bf16 %v1655_v63  ;;  %v1656_v5 = vunpack.i.l.bf16 %v1655_v63  ;;  %1560 = vmatprep.subr.bf16.mxu0 %v1770_v50  ;;  %v1164_v59 = vld [vmem:[%s2133_s8] sm:$0xf] }
 0x18c   : > { %v789_v2 = vsel %vm784_vm5, %v780_v1, %v1661_v62  ;;  %v790_v49 = vsel %vm784_vm5, %v781_v0, %v1662_v61  ;;  %1539 = vmatmul.mubr.msk.bf16.vlgmr.msra.gmra.mrb[0].mxu1 %vm852_vm6, %v794_v60  ;;  %v1171_v60 = vsel %vm1169_vm8, %v1164_v59, 0  ;;  %v1401_v62 = vld [vmem:[%s2131_s6] ss:$0 sm:$0xff] }
 0x18d   : > { %v795_v54 = vpack.c.bf16 %v790_v49, %v789_v2  ;;  %1547 = vmatpush3.bf16.msra.mxu1 %v1686_v29  ;;  %v783_v12 = vsel %vm775_vm4, %v630_v28, %v1657_v3  ;;  %v782_v13 = vsel %vm775_vm4, %v631_v30, %v1656_v5 }
 0x18e   : > { %v1665_v6 = vpop.permute.xlu1 %1664  ;;  %1548 = vmatprep.subr.bf16.mxu1 %v1687_v17  ;;  %1561 = vmatpush3.bf16.msra.mxu0 %v1689_v51  ;;  %v1232_v51 = vunpack.c.l.bf16 %v1904_v9 }
 0x18f   : > { %v1667_v7 = vunpack.i.h.bf16 %v1665_v6  ;;  %v1666_v8 = vunpack.i.l.bf16 %v1665_v6  ;;  %1542 = vmatprep.mubr.msk.bf16.mxu1 %vm852_vm6, %v795_v54  ;;  %1562 = vmatprep.subr.bf16.mxu0 %v1770_v50 }
 0x191   : > { %v791_v14 = vsel %vm784_vm5, %v782_v13, %v1666_v8  ;;  %v792_v15 = vsel %vm784_vm5, %v783_v12, %v1667_v7  ;;  %1549 = vmatpush3.bf16.msra.mxu1 %v1687_v17 }
 0x192   : > { %v796_v16 = vpack.c.bf16 %v792_v15, %v791_v14  ;;  %1578 = vmatprep.subr.bf16.mxu1 %v1770_v50  ;;  %1563 = vmatpush3.bf16.msra.mxu0 %v1690_v52  ;;  %v1233_v52 = vunpack.c.h.bf16 %v1904_v9 }
 0x193   : > { %1564 = vmatprep.subr.bf16.mxu0 %v1770_v50 }
 0x194   : > { %1543 = vmatmul.mubr.msk.bf16.gmra.mrb[4].mxu1 %vm852_vm6, %v796_v16 }
 0x196   : > { %1565 = vmatpush3.bf16.msra.mxu0 %v1691_v53 }
 0x197   : > { %1566 = vmatprep.subr.bf16.mxu0 %v1770_v50 }
 0x19a   : > { %1567 = vmatpush3.bf16.msra.mxu0 %v1692_v55  ;;  %v1234_v55 = vunpack.c.l.bf16 %v1906_v10 }
 0x19b   : > { %1568 = vmatprep.subr.bf16.mxu0 %v1770_v50 }
 0x19e   : > { %1569 = vmatpush3.bf16.msra.mxu0 %v1693_v56  ;;  %v1235_v56 = vunpack.c.h.bf16 %v1906_v10 }
 0x19f   : > { %1570 = vmatprep.subr.bf16.mxu0 %v1770_v50 }
 0x1a2   : > { %1571 = vmatpush3.bf16.msra.mxu0 %v1694_v57  ;;  %v1236_v57 = vunpack.c.l.bf16 %v1910_v11 }
 0x1a3   : > { %1572 = vmatprep.subr.bf16.mxu0 %v1770_v50 }
 0x1a6   : > { %1573 = vmatpush3.bf16.msra.mxu0 %v1695_v58 }
 0x25f   : > { %v1540_v20 = vpop.f32.mrb[0].mxu1 }
 0x260   : > { %v908_v21 = vadd.f32 %v1540_v20, %v1390_v18  ;;  %v899_v22 = vpop.f32.mrb[1].mxu1 }
 0x261   : > { %v900_v23 = vadd.f32 %v1390_v18, %v899_v22  ;;  %v1541_v24 = vpop.f32.mrb[2].mxu1 }
 0x262   : > { %v911_v25 = vadd.f32 %v1541_v24, %v1390_v18  ;;  %v902_v26 = vpop.f32.mrb[3].mxu1  ;;  %v932_v28 = vmax.f32 %v908_v21, 0.0 }
 0x263   : > { %v903_v27 = vadd.f32 %v1390_v18, %v902_v26  ;;  %v930_v30 = vmax.f32 %v900_v23, 0.0 }
 0x264   : > { %v933_v29 = vmax.f32 %v911_v25, 0.0 }
 0x265   : > { %v931_v31 = vmax.f32 %v903_v27, 0.0 }
 0x266   : > { %v939_v32 = vpack.c.bf16 %v933_v29, %v932_v28 }
 0x267   : > { %v938_v33 = vpack.c.bf16 %v931_v31, %v930_v30  ;;  %v1544_v34 = vpop.f32.mrb[4].mxu1 }
 0x268   : > { %v924_v35 = vadd.f32 %v1544_v34, %v1390_v18  ;;  %v915_v36 = vpop.f32.mrb[5].mxu1 }
 0x269   : > { %v916_v37 = vadd.f32 %v1390_v18, %v915_v36  ;;  %v1545_v38 = vpop.f32.mrb[6].mxu1  ;;  %1550 = vmatprep.mubr.msk.bf16.mxu1 %vm775_vm4, %v938_v33 }
 0x26a   : > { %v927_v39 = vadd.f32 %v1545_v38, %v1390_v18  ;;  %v918_v40 = vpop.f32.mrb[7].mxu1  ;;  %1551 = vmatmul.mubr.msk.bf16.vlgmr.msra.gmra.mrb[8].mxu1 %vm775_vm4, %v939_v32  ;;  %v936_v42 = vmax.f32 %v924_v35, 0.0 }
 0x26b   : > { %v919_v41 = vadd.f32 %v1390_v18, %v918_v40  ;;  %v934_v44 = vmax.f32 %v916_v37, 0.0  ;;  %1579 = vmatpush3.bf16.msra.mxu1 %v1171_v60 }
 0x26c   : > { %v937_v43 = vmax.f32 %v927_v39, 0.0 }
 0x26d   : > { %v935_v45 = vmax.f32 %v919_v41, 0.0 }
 0x26e   : > { %v941_v46 = vpack.c.bf16 %v937_v43, %v936_v42 }
 0x26f   : > { %v940_v47 = vpack.c.bf16 %v935_v45, %v934_v44 }
 0x271   : > { %1554 = vmatprep.mubr.msk.bf16.mxu1 %vm775_vm4, %v940_v47 }
 0x272   : > { %1555 = vmatmul.mubr.msk.bf16.gmra.mrb[12].mxu1 %vm775_vm4, %v941_v46  ;;  %v1220_v46 = vsub.s32 0, %v1928_v19  ;;  %v1237_v19 = vunpack.c.h.bf16 %v1910_v11 }
 0x273   : > { %1580 = vmatprep.mubr.msk.bf16.mxu1 %vm1771_vm7, %v1770_v50  ;;  %v1231_v50 = vunpack.c.h.bf16 %v1889_v4 }
 0x33d   : > { %v1552_v61 = vpop.f32.mrb[8].mxu1 }
 0x33e   : > { %v1011_v63 = vpop.f32.mrb[9].mxu1  ;;  %v1020_v3 = vadd.f32 %v1552_v61, %v1401_v62 }
 0x33f   : > { %v1553_v0 = vpop.f32.mrb[10].mxu1  ;;  %v1012_v2 = vadd.f32 %v1401_v62, %v1011_v63 }
 0x340   : > { %v1014_v1 = vpop.f32.mrb[11].mxu1  ;;  %v1023_v54 = vadd.f32 %v1553_v0, %v1401_v62 }
 0x341   : > { %v1015_v49 = vadd.f32 %v1401_v62, %v1014_v1 }
 0x343   : > { %v1042_v5 = vadd.f32 %v1015_v49, %v1012_v2 }
 0x345   : > { %v1043_v6 = vadd.f32 %v1042_v5, %v1020_v3  ;;  %v1556_v7 = vpop.f32.mrb[12].mxu1 }
 0x346   : > { %v1027_v8 = vpop.f32.mrb[13].mxu1  ;;  %v1036_v18 = vadd.f32 %v1556_v7, %v1401_v62 }
 0x347   : > { %v1028_v12 = vadd.f32 %v1401_v62, %v1027_v8  ;;  %v1044_v13 = vadd.f32 %v1043_v6, %v1023_v54  ;;  %v1557_v14 = vpop.f32.mrb[14].mxu1 }
 0x348   : > { %v1030_v15 = vpop.f32.mrb[15].mxu1  ;;  %v1039_v21 = vadd.f32 %v1557_v14, %v1401_v62 }
 0x349   : > { %v1045_v16 = vadd.f32 %v1044_v13, %v1028_v12  ;;  %v1031_v17 = vadd.f32 %v1401_v62, %v1030_v15 }
 0x34b   : > { %v1046_v20 = vadd.f32 %v1045_v16, %v1031_v17 }
 0x34d   : > { %v1047_v22 = vadd.f32 %v1046_v20, %v1036_v18 }
 0x34f   : > { %v1048_v23 = vadd.f32 %v1047_v22, %v1039_v21 }
 0x351   : > { %v1049_v24 = vrot.slane %v1048_v23, 4 }
 0x353   : > { %v1050_v25 = vadd.f32 %v1049_v24, %v1048_v23 }
 0x355   : > { %v1051_v26 = vrot.slane %v1050_v25, 2 }
 0x357   : > { %v1052_v27 = vadd.f32 %v1051_v26, %v1050_v25 }
 0x359   : > { %v1053_v28 = vrot.slane %v1052_v27, 1 }
 0x35b   : > { %v1054_v29 = vadd.f32 %v1053_v28, %v1052_v27 }
 0x35d   : > { %v1056_v30 = vmul.f32 0.015625, %v1054_v29 }
 0x35f   : > { %v1057_v31 = vpack.c.bf16 %v1056_v30, %v1056_v30 }
 0x361   : > { %1575 = vmatmul.mubr.bf16.vlgmr.msra.gmra.mrb[8].mxu0 %v1057_v31 }
 0x434   : > { %v1156_v32 = vpop.f32.mrb[8].mxu0 }
 0x435   : > { %v1162_v33 = vmax.f32 %v1156_v32, 0.0  ;;  %v1576_v34 = vpop.f32.mrb[9].mxu0 }
 0x436   : > { %v1159_v35 = vpop.f32.mrb[10].mxu0 }
 0x437   : > { %v1163_v36 = vpack.c.bf16 %v1162_v33, %v1162_v33  ;;  %v1577_v37 = vpop.f32.mrb[11].mxu0 }
 0x439   : > { %1581 = vmatmul.mubr.msk.bf16.vlgmr.msra.gmra.mrb[16].mxu1 %vm1165_vm9, %v1163_v36 }
 0x50c   : > { %v1207_v38 = vpop.f32.mrb[16].mxu1 }
 0x50d   : > { %v1213_v39 = vsub.f32 0.0, %v1207_v38  ;;  %v1582_v40 = vpop.f32.mrb[17].mxu1 }
 0x50e   : > { %v1210_v41 = vpop.f32.mrb[18].mxu1 }
 0x50f   : > { %v1214_v42 = vmul.f32 1.442695, %v1213_v39  ;;  %v1583_v43 = vpop.f32.mrb[19].mxu1 }
 0x511   : > { %1700 = vpow2.f32 %v1214_v42 }
 0x51b   : > { %v1701_v44 = vpop.eup %1700 }
 0x51c   : > { %v1216_v45 = vadd.f32 1.0, %v1701_v44 }
 0x51e   : > { %1702 = vrcp.f32 %v1216_v45 }
 0x528   : > { %v1703_v47 = vpop.eup %1702 }
 0x529   : > { %v1221_v53 = vrot.slane %v1703_v47, %v1220_v46 }
 0x52b   : > { %v1222_v58 = vmul.f32 %v1221_v53, %v1012_v2  ;;  %v1223_v59 = vmul.f32 %v1221_v53, %v1015_v49  ;;  %v1224_v60 = vmul.f32 %v1221_v53, %v1020_v3  ;;  %v1225_v4 = vmul.f32 %v1221_v53, %v1023_v54 }
 0x52c   : > { %v1226_v61 = vmul.f32 %v1221_v53, %v1028_v12  ;;  %v1227_v62 = vmul.f32 %v1221_v53, %v1031_v17  ;;  %v1228_v63 = vmul.f32 %v1221_v53, %v1036_v18  ;;  %v1229_v9 = vmul.f32 %v1221_v53, %v1039_v21 }
 0x52d   : > { %v1238_v0 = vadd.f32 %v1230_v48, %v1222_v58  ;;  %v1239_v1 = vadd.f32 %v1231_v50, %v1223_v59  ;;  %v1240_v5 = vadd.f32 %v1232_v51, %v1224_v60  ;;  %v1241_v6 = vadd.f32 %v1233_v52, %v1225_v4 }
 0x52e   : > { %v1242_v7 = vadd.f32 %v1234_v55, %v1226_v61  ;;  %v1243_v8 = vadd.f32 %v1235_v56, %v1227_v62  ;;  %v1244_v10 = vadd.f32 %v1236_v57, %v1228_v63  ;;  %v1245_v13 = vadd.f32 %v1237_v19, %v1229_v9 }
 0x52f   : > { %v1246_v14 = vmax.f32 %v1238_v0, 0.0  ;;  %v1247_v11 = vmax.f32 %v1239_v1, 0.0  ;;  %v1248_v2 = vmax.f32 %v1240_v5, 0.0  ;;  %v1249_v15 = vmax.f32 %v1241_v6, 0.0 }
 0x530   : > { %v1250_v49 = vmax.f32 %v1242_v7, 0.0  ;;  %v1251_v3 = vmax.f32 %v1243_v8, 0.0  ;;  %v1252_v54 = vmax.f32 %v1244_v10, 0.0  ;;  %v1253_v12 = vmax.f32 %v1245_v13, 0.0 }
 0x531   : > { %v1443_v16 = vpack.c.bf16 %v1247_v11, %v1246_v14  ;;  %v1448_v17 = vpack.c.bf16 %v1249_v15, %v1248_v2 }
 0x532   : > { %v1453_v18 = vpack.c.bf16 %v1251_v3, %v1250_v49  ;;  %v1458_v20 = vpack.c.bf16 %v1253_v12, %v1252_v54 }
 0x533   : > { %1444 = vst [vmem:[%s325_s29] sm:$0xff] %v1443_v16   ;;  %1460 = vst [vmem:[%s325_s29 + $0x8] sm:$0xff] %v1448_v17  }
 0x534   : > { %1461 = vst [vmem:[%s325_s29 + $0x10] sm:$0xff] %v1453_v18   ;;  %1462 = vst [vmem:[%s325_s29 + $0x18] sm:$0xff] %v1458_v20  }
 0x535   : > { %1717 = shalt.err (!%p1714_p3)
}
 0x536   : > { %s1718_s26 = scalar_lea.hbm %s2076_s23, 512  ;;  %s1722_s17 = scalar_lea.hbm %s2134_s9, 1024 }
 0x537   : > { %p1719_p4 = scmp.ne.s32.totalorder %s2076_s23, %s1718_s26  ;;  %p1723_p9 = scmp.lt.u32.totalorder %s2076_s23, %s2134_s9 }
 0x538   : > { %p1724_p10 = scmp.lt.u32.totalorder %s1722_s17, %s1718_s26  ;;  %p1726_p12 = scmp.lt.u32.totalorder %s1718_s26, %s2076_s23 }
 0x539   : > { %p1720_p7 = pnand %p1719_p4, %p1862_p5 }
 0x53a   : > { %p1725_p11 = por %p1724_p10, %p1723_p9 }
 0x53b   : > { %p1721_p8 = pneg %p1720_p7 }
 0x53c   : > { %p1727_p13 = por %p1726_p12, %p1725_p11 }
 0x53e   : > { %p1728_p0 = pnand %p1727_p13, %p1721_p8 }
 0x540   : > { %1731 = shalt.err (!%p1728_p0)
}
 0x541   : > { %s1773_s24 = smov 4  }
 0x542   : > { %1584 = dma.vmem_to_hbm [thread:$0]  (%p1862_p5), %s2078_s14, 512, %s2076_s23, %s2082_s13, %s1769_s22, %s1769_s22, %s1773_s24  }
 0x543 PF: > { %p1590_p1 = scmp.ge.s32.totalorder %s1766_s12, 2  ;;  %s1323_s25 = sand.u32 1, %s1754_s30  }
 0x544   : > { %s1324_s27 = scalar_lea.sflag [#allocation3], %s1323_s25 }
 0x545   : > { %p1587_p2 = pnand %p1590_p1, %p1866_p6 }
 0x547   : > { %1749 = dma.done.wait (!%p1587_p2), %s1324_s27, 512  }
 0x548   : > { %1751 = vsyncadd (!%p1587_p2), %s1324_s27, 4294966784  ;;  %p19_p3 = scmp.ge.s32.totalorder %s1849_s15, 4   ;;  %s2139_s30 = smov %s1758_s10 }
 0x549   : > { %s2140_s10 = smov %s1762_s11  ;;  %s2141_s11 = smov %s1860_s18 }
 0x54a   : > { %s2142_s12 = smov %s1849_s15  ;;  %21 = sbr.rel (!%p19_p3) target bundleno = 3 (0x3), region = 91 }
 0x551   :  { %1329 = vsyncpa [#allocation3], 1 }
 0x552   :  { %1331 = vsyncpa [#allocation3 + $0x1], 1 }

</bundles_post_ra>
